<compile_context>
chip_gen: v7x
topology: tpu7x:2x2x1
jax: 0.10.0
libtpu: 0.0.40
codegen_flags: <defaults>
</compile_context>

<pallas_src>
import jax
import jax.numpy as jnp
from jax.experimental import pallas as pl
from jax.experimental.pallas import tpu as pltpu

K_PAD = 8      # sublane-aligned rows of the weight tile (rows 0..1 = W_total, row 2 = b_total)
N_PAD = 128    # lane-aligned columns of the weight tile
BIAS_ROW = 2   # unused weight row that carries the fused bias


def fused_linear_kernel(x_ref, w_ref, o_ref):
    # x_ref: (1, 2, 2) raw input; the permute chain collapses to x1[0] viewed as (2, 1, 2).
    # w_ref: (8, 128) padded: rows 0..1, cols 0..1 hold W_total = W1^T @ W2^T @ W3^T,
    #        row BIAS_ROW, cols 0..1 hold b_total. Everything else is zero.
    x = x_ref[0]                       # (2, 2)
    w = w_ref[...]                     # (8, 128)
    # out[m, n] = x[m, 0] * W[0, n] + x[m, 1] * W[1, n] + b[n]  (VPU only, no MXU)
    out = (x[:, 0:1] * w[0:1, :]
           + x[:, 1:2] * w[1:2, :]
           + w[BIAS_ROW:BIAS_ROW + 1, :])          # (2, 128); only lanes 0..1 are live
    o_ref[:, 0, :] = out[:, :2].astype(o_ref.dtype)


_vmem_spec = pl.BlockSpec(memory_space=pltpu.MemorySpace.VMEM)

_fused_call = pl.pallas_call(
    fused_linear_kernel,
    out_shape=jax.ShapeDtypeStruct((2, 1, 2), jnp.float32),
    in_specs=[_vmem_spec, _vmem_spec],
    out_specs=_vmem_spec,
    cost_estimate=pl.CostEstimate(
        flops=2 * 2 * 128 * 3,                       # two muls + two adds on a (2,128) tile
        transcendentals=0,
        bytes_accessed=4 * (1 * 2 * 2 + K_PAD * N_PAD + 2 * 1 * 2),
    ),
)


def prepare_params(params):
    """Fuse linear1 -> linear2 -> linear3 and pad once (called once at init, not per forward)."""
    w1, b1 = params["w1"], params["b1"]   # (6, 2), (6,)
    w2, b2 = params["w2"], params["b2"]   # (2, 6), (2,)
    w3, b3 = params["w3"], params["b3"]   # (2, 2), (2,)

    # x @ W1^T @ W2^T @ W3^T + ((b1 @ W2^T + b2) @ W3^T + b3)
    wt = w1.T @ w2.T @ w3.T               # (2, 2)  (in_features, out_features)
    bt = (b1 @ w2.T + b2) @ w3.T + b3     # (2,)

    w_pad = jnp.zeros((K_PAD, N_PAD), jnp.float32)
    w_pad = w_pad.at[: wt.shape[0], : wt.shape[1]].set(wt)
    w_pad = w_pad.at[BIAS_ROW, : bt.shape[0]].set(bt)   # bias folded into an unused weight row
    return w_pad


def model_forward(x1, w_pad):
    # Single custom call; padding of x and production of the (2,1,2) output happen inside the kernel.
    return _fused_call(x1, w_pad)


def init_linear(key, out_f, in_f):
    # deterministic, torch.nn.Linear-style uniform(-1/sqrt(in), 1/sqrt(in))
    kw, kb = jax.random.split(key)
    bound = 1.0 / (in_f ** 0.5)
    w = jax.random.uniform(kw, (out_f, in_f), jnp.float32, -bound, bound)
    b = jax.random.uniform(kb, (out_f,), jnp.float32, -bound, bound)
    return w, b


if __name__ == "__main__":
    key = jax.random.PRNGKey(0)
    kx, k1, k2, k3, k4 = jax.random.split(key, 5)

    x1 = jax.random.normal(kx, (1, 2, 2), jnp.float32)

    w1, b1 = init_linear(k1, 6, 2)   # linear1: 2 -> 6
    w2, b2 = init_linear(k2, 2, 6)   # linear2 (declared (2,6); used as 6 -> 2, see TODO(synk))
    w3, b3 = init_linear(k3, 2, 2)   # linear3: 2 -> 2
    w4, b4 = init_linear(k4, 2, 2)   # linear4: declared but unused in forward

    params = dict(w1=w1, b1=b1, w2=w2, b2=b2, w3=w3, b3=b3)

    # one-time parameter prep (fusion + bias-in-weight + padding), kept out of the per-call path
    w_pad = prepare_params(params)
    w_pad = jax.block_until_ready(w_pad)

    forward = jax.jit(model_forward)
    out = forward(x1, w_pad)
    out = jax.block_until_ready(out)

    # pure-JAX reference (sequential, un-fused evaluation of the torch forward)
    x4_ref = jnp.transpose(jnp.transpose(x1, (2, 1, 0)), (1, 2, 0))   # (2, 1, 2)
    ref = x4_ref @ w1.T + b1
    ref = ref @ w2.T + b2
    ref = ref @ w3.T + b3

    assert out.shape == (2, 1, 2), out.shape
    assert jnp.allclose(out, ref, atol=1e-5, rtol=1e-5)

    print("KERNEL_OK")
</pallas_src>

<mosaic_0001>
module attributes {stable_mosaic.version = 11 : i64} {
  func.func @fused_linear_kernel(%arg0: memref<1x2x2xf32, #tpu.memory_space<vmem>>, %arg1: memref<8x128xf32, #tpu.memory_space<vmem>>, %arg2: memref<2x1x2xf32, #tpu.memory_space<vmem>>) attributes {dimension_semantics = [], scalar_prefetch = 0 : i64, scratch_operands = 0 : i64, tpu.core_type = #tpu.core_type<tc>} {
    %c0 = arith.constant 0 : index
    %c0_0 = arith.constant 0 : index
    %c0_1 = arith.constant 0 : index
    %0 = vector.load %arg0[%c0, %c0_0, %c0_1] : memref<1x2x2xf32, #tpu.memory_space<vmem>>, vector<1x2x2xf32>
    %1 = vector.shape_cast %0 : vector<1x2x2xf32> to vector<2x2xf32>
    %c0_2 = arith.constant 0 : index
    %c0_3 = arith.constant 0 : index
    %2 = vector.load %arg1[%c0_2, %c0_3] : memref<8x128xf32, #tpu.memory_space<vmem>>, vector<8x128xf32>
    %3 = vector.extract_strided_slice %1 {offsets = [0, 0], sizes = [2, 1], strides = [1, 1]} : vector<2x2xf32> to vector<2x1xf32>
    %4 = vector.extract_strided_slice %2 {offsets = [0, 0], sizes = [1, 128], strides = [1, 1]} : vector<8x128xf32> to vector<1x128xf32>
    %5 = vector.broadcast %3 : vector<2x1xf32> to vector<2x128xf32>
    %6 = vector.broadcast %4 : vector<1x128xf32> to vector<2x128xf32>
    %7 = arith.mulf %5, %6 : vector<2x128xf32>
    %8 = vector.extract_strided_slice %1 {offsets = [0, 1], sizes = [2, 1], strides = [1, 1]} : vector<2x2xf32> to vector<2x1xf32>
    %9 = vector.extract_strided_slice %2 {offsets = [1, 0], sizes = [1, 128], strides = [1, 1]} : vector<8x128xf32> to vector<1x128xf32>
    %10 = vector.broadcast %8 : vector<2x1xf32> to vector<2x128xf32>
    %11 = vector.broadcast %9 : vector<1x128xf32> to vector<2x128xf32>
    %12 = arith.mulf %10, %11 : vector<2x128xf32>
    %13 = arith.addf %7, %12 : vector<2x128xf32>
    %14 = vector.extract_strided_slice %2 {offsets = [2, 0], sizes = [1, 128], strides = [1, 1]} : vector<8x128xf32> to vector<1x128xf32>
    %15 = vector.broadcast %14 : vector<1x128xf32> to vector<2x128xf32>
    %16 = arith.addf %13, %15 : vector<2x128xf32>
    %17 = vector.extract_strided_slice %16 {offsets = [0, 0], sizes = [2, 2], strides = [1, 1]} : vector<2x128xf32> to vector<2x2xf32>
    %c0_4 = arith.constant 0 : index
    %c0_5 = arith.constant 0 : index
    %c0_6 = arith.constant 0 : index
    %18 = vector.load %arg2[%c0_4, %c0_5, %c0_6] : memref<2x1x2xf32, #tpu.memory_space<vmem>>, vector<2x1x2xf32>
    %19 = vector.shape_cast %18 : vector<2x1x2xf32> to vector<2x2xf32>
    %20 = vector.shape_cast %17 : vector<2x2xf32> to vector<2x1x2xf32>
    tpu.vector_store %arg2[%c0_4, %c0_5, %c0_6], %20 {strides = array<i32>} : memref<2x1x2xf32, #tpu.memory_space<vmem>>, vector<2x1x2xf32>,
    return
  }
}

</mosaic_0001>

<bundles_post_ra>
// kernel: model_forward.1
= control target key start
LH: loop header
LB: loop body
LE: loop exit
PB: predicated region body
PF: predicated region fallthrough
CT: control target
= control target key end

     0   :  { %7 = vsyncpa [#allocation3], 0  ;;  %s250_s0 = inlined_call_operand.hbm [shape: f32[1,2,2], index: 0, kind: input, shape index: {}]   ;;  %s251_s1 = inlined_call_operand.hbm [shape: f32[8,128], index: 1, kind: input, shape index: {}]   ;;  %s252_s2 = inlined_call_operand.hbm [shape: f32[2,1,2], index: 2, kind: output, shape index: {}]  }
   0x1   :  { %8 = vsyncpa [#allocation6], 0 }
   0x2   :  { %9 = vsyncpa [#allocation4], 0  ;;  %s191_s9 = smov [#allocation2]   ;;  %s192_s11 = smov [#allocation5]  }
   0x3   :  { %s16_s10 = sshll.u32 %s191_s9, 4  ;;  %s26_s12 = sshll.u32 %s192_s11, 4  ;;  %s17_s10 = int_to_ptr.vmem [resolvable:$true] %s16_s10  ;;  %s27_s12 = int_to_ptr.vmem [resolvable:$true] %s26_s12 }
   0x4   :  { %s119_s15 = scalar_lea.hbm %s250_s0, 32 }
   0x5   :  { %p120_p0 = scmp.ne.s32.totalorder %s250_s0, %s119_s15  ;;  %p123_p1 = scmp.lt.u32.totalorder %s119_s15, %s250_s0 }
   0x7   :  { %p125_p2 = pnand %p123_p1, %p120_p0 }
   0x9   :  { %128 = shalt.err (!%p125_p2)
}
   0xa   :  { %s129_s20 = scalar_lea.vmem %s17_s10, 32  ;;  %p134_p4 = scmp.lt.s32.totalorder %s17_s10, %s17_s10 }
   0xb   :  { %p130_p3 = scmp.ne.s32.totalorder %s17_s10, %s129_s20  ;;  %p135_p5 = scmp.lt.s32.totalorder %s129_s20, %s129_s20 }
   0xd   :  { %p136_p6 = por %p135_p5, %p134_p4 }
   0xf   :  { %p137_p7 = pnand %p136_p6, %p130_p3 }
  0x11   :  { %140 = shalt.err (!%p137_p7)
}
  0x12   :  { %19 = dma.hbm_to_vmem [thread:$0]  %s250_s0, 32, %s17_s10, [#allocation3]  }
  0x13   :  { %s141_s25 = scalar_lea.hbm %s251_s1, 128 }
  0x14   :  { %p142_p8 = scmp.ne.s32.totalorder %s251_s1, %s141_s25  ;;  %p145_p9 = scmp.lt.u32.totalorder %s141_s25, %s251_s1 }
  0x16   :  { %p147_p10 = pnand %p145_p9, %p142_p8 }
  0x18   :  { %150 = shalt.err (!%p147_p10)
}
  0x19   :  { %s151_s30 = scalar_lea.vmem %s27_s12, 128  ;;  %p156_p12 = scmp.lt.s32.totalorder %s27_s12, %s27_s12 }
  0x1a   :  { %p152_p11 = scmp.ne.s32.totalorder %s27_s12, %s151_s30  ;;  %p157_p13 = scmp.lt.s32.totalorder %s151_s30, %s151_s30 }
  0x1c   :  { %p158_p0 = por %p157_p13, %p156_p12 }
  0x1e   :  { %p159_p1 = pnand %p158_p0, %p152_p11 }
  0x20   :  { %162 = shalt.err (!%p159_p1)
}
  0x21   :  { %29 = dma.hbm_to_vmem [thread:$0]  %s251_s1, 128, %s27_s12, [#allocation6]  }
  0x22   :  { %185 = dma.done.wait [#allocation3], 32  }
  0x23   :  { %186 = vsyncadd [#allocation3], 4294967264 }
  0x24   :  { %187 = dma.done.wait [#allocation6], 128  }
  0x25   :  { %188 = vsyncadd [#allocation6], 4294967168  ;;  %v193_v0 = vmov 0   ;;  %v36_v1 = vld [vmem:[#allocation2] sm:$0x3]  ;;  %v194_v2 = vmov 1   ;;  %v43_v3 = vlaneseq }
  0x26   :  { %117 = vset.pattern.permute.xlu0 %v193_v0  ;;  %v37_v7 = vld [vmem:[#allocation5] sm:$0xff]  ;;  %v195_v9 = vmov 1966171168   ;;  %s196_s1 = smov [#allocation7]   ;;  %vm88_vm0 = vcmask 8192  }
  0x27   :  { %40 = vperm.xlu0 %117, %v36_v1   ;;  %v44_v4 = vshrl.u32 %v43_v3, 7  ;;  %v65_v10 = vunpack.c.l.s4 %v195_v9  ;;  %s96_s4 = sshll.u32 %s196_s1, 4  ;;  %s97_s4 = int_to_ptr.vmem [resolvable:$true] %s96_s4 }
  0x28   :  { %s163_s5 = scalar_lea.vmem %s97_s4, 32  ;;  %p168_p3 = scmp.lt.s32.totalorder %s97_s4, %s97_s4 }
  0x29   :  { %v45_v5 = vsub.s32 0, %v44_v4  ;;  %v54_v6 = vsub.s32 1, %v44_v4  ;;  %v60_v13 = vsub.s32 2, %v44_v4  ;;  %v66_v14 = vunpack.c.0.s8 %v65_v10  ;;  %p164_p2 = scmp.ne.s32.totalorder %s97_s4, %s163_s5  ;;  %p169_p4 = scmp.lt.s32.totalorder %s163_s5, %s163_s5 }
  0x2b   :  { %118 = vset.pattern.permute.xlu0 %v194_v2  ;;  %v46_v11 = vrot.slane %v37_v7, %v45_v5  ;;  %v55_v12 = vrot.slane %v37_v7, %v54_v6  ;;  %v61_v17 = vrot.slane %v37_v7, %v60_v13  ;;  %v69_v19 = vsub.s32 %v66_v14, %v44_v4  ;;  %p170_p5 = por %p169_p4, %p168_p3 }
  0x2c   :  { %49 = vperm.xlu0 %118, %v36_v1  }
  0x2d   :  { %p171_p6 = pnand %p170_p5, %p164_p2 }
  0xa6   :  { %v41_v8 = vpop.permute.xlu0 %40 }
  0xa7   :  { %v47_v16 = vmul.f32 %v46_v11, %v41_v8 }
  0xab   :  { %v50_v15 = vpop.permute.xlu0 %49 }
  0xac   :  { %v56_v18 = vmul.f32 %v55_v12, %v50_v15 }
  0xae   :  { %v57_v20 = vadd.f32 %v56_v18, %v47_v16 }
  0xb0   :  { %v62_v21 = vadd.f32 %v61_v17, %v57_v20 }
  0xb2   :  { %v70_v22 = vrot.slane %v62_v21, %v69_v19 }
  0xb4   :  { %v71_v23 = vcombine.high %v70_v22, %v70_v22  ;;  %v78_v24 = vrot.slane %v70_v22, %v69_v19 }
  0xb6   :  { %v85_v25 = vrot.slane %v71_v23, %v69_v19  ;;  %89 = vst.msk [vmem:[#allocation7] sm:$0x1] %vm88_vm0, %v78_v24 }
  0xb8   :  { %90 = vst.msk [vmem:[#allocation7 + $0x1] sm:$0x1] %vm88_vm0, %v85_v25 }
  0xb9   :  { %174 = shalt.err (!%p171_p6)
}
  0xba   :  { %s175_s8 = scalar_lea.hbm %s252_s2, 32 }
  0xbb   :  { %p176_p7 = scmp.ne.s32.totalorder %s252_s2, %s175_s8  ;;  %p179_p8 = scmp.lt.u32.totalorder %s175_s8, %s252_s2 }
  0xbd   :  { %p181_p9 = pnand %p179_p8, %p176_p7 }
  0xbf   :  { %184 = shalt.err (!%p181_p9)
}
  0xc0   :  { %s197_s13 = smov 16   ;;  %s198_s14 = smov 1  }
  0xc1   :  { %102 = dma.vmem_to_hbm [thread:$0]  %s97_s4, 32, %s252_s2, [#allocation4], %s197_s13, %s197_s13, %s198_s14  }
  0xc2   :  { %189 = dma.done.wait [#allocation4], 32  }
  0xc3   :  { %190 = vsyncadd [#allocation4], 4294967264 }
  0xc4   :  { %106 = vsyncpa [#allocation3], 1 }
  0xc5   :  { %107 = vsyncpa [#allocation6], 1 }
  0xc6   :  { %108 = vsyncpa [#allocation4], 1 }

</bundles_post_ra>
